<compile_context>
chip_gen: v7x
topology: tpu7x:2x2x1
jax: 0.10.0
libtpu: 0.0.40
codegen_flags: <defaults>
</compile_context>

<pallas_src>
import jax
import jax.numpy as jnp
from jax.experimental import pallas as pl
from jax.experimental.pallas import tpu as pltpu

IN_DIM = 507
IN_PAD = 512          # 507 padded up to a lane-aligned K for fc1
H1, H2 = 256, 128
H3 = 64
H3_PAD = 128          # 64 padded to a lane-full hidden dim for fc3/out
OUT_DIM = 3
OUT_PAD = 128         # lane-dense output slab; sliced back to 3 in the wrapper


def _round_up(n, m):
    return ((n + m - 1) // m) * m


def _mlp_kernel(x_ref,
                w1_ref, b1_ref,
                w2_ref, b2_ref,
                w3_ref, b3_ref,
                w4_ref, b4_ref,
                o_ref):
    # x arrives already in bf16 (cast fused with the pad in the wrapper).
    # Matmuls accumulate in f32 on the MXU; bias adds + ReLU stay in f32;
    # activations are re-cast to bf16 only for the next MXU feed.
    x = x_ref[...]

    # fc1 + ReLU
    h = jnp.dot(x, w1_ref[...], preferred_element_type=jnp.float32) + b1_ref[...]
    h = jnp.maximum(h, 0.0).astype(jnp.bfloat16)

    # fc2 + ReLU
    h = jnp.dot(h, w2_ref[...], preferred_element_type=jnp.float32) + b2_ref[...]
    h = jnp.maximum(h, 0.0).astype(jnp.bfloat16)

    # fc3 + ReLU (N padded 64 -> 128; pad cols are exactly zero)
    h = jnp.dot(h, w3_ref[...], preferred_element_type=jnp.float32) + b3_ref[...]
    h = jnp.maximum(h, 0.0).astype(jnp.bfloat16)

    # out (no activation), lane-dense (TB, 128) bf16 store
    y = jnp.dot(h, w4_ref[...], preferred_element_type=jnp.float32) + b4_ref[...]
    o_ref[...] = y.astype(o_ref.dtype)


def _choose_tb(B, tb):
    """Pick a batch tile: multiples of 16 (bf16 sublane packing), large for
    throughput, but >= 2 grid steps for mid-size batches so v7x's second
    TensorCore gets work."""
    if B > tb:
        return tb
    if B >= 64:
        # Split into (at least) two grid steps for megacore sharding.
        half = _round_up((B + 1) // 2, 16)
        return max(32, min(tb, half))
    # Tiny batch / inference: single sublane-aligned step, no extra overhead.
    return _round_up(max(B, 1), 16)


def network_forward(x, params, *, tb=1024):
    """Forward pass of the ropod DQN Network.

    x: (B, 507) float32
    params: dict with
        w1: (512, 256) bf16 (rows 507..511 zero), b1: (1, 256) f32
        w2: (256, 128) bf16,                      b2: (1, 128) f32
        w3: (128, 128) bf16 (cols 64..127 zero),  b3: (1, 128) f32 (padded)
        w4: (128, 128) bf16 (rows 64.., cols 3.. zero), b4: (1, 128) f32 (padded)
    returns: (B, 3) float32
    """
    B = x.shape[0]
    TB = _choose_tb(B, tb)
    Bp = _round_up(B, TB)

    # Single pad op (batch rows + feature cols 507 -> 512) fused with the
    # bf16 cast -- one read / one write, and halves the dominant x DMA.
    xp = jnp.pad(x, ((0, Bp - B), (0, IN_PAD - IN_DIM))).astype(jnp.bfloat16)

    grid = (Bp // TB,)

    # x / out tiled over the batch axis; weights use constant index maps so
    # they are fetched once and stay resident in VMEM across grid steps.
    x_spec = pl.BlockSpec((TB, IN_PAD), lambda i: (i, 0))
    w1_spec = pl.BlockSpec((IN_PAD, H1), lambda i: (0, 0))
    b1_spec = pl.BlockSpec((1, H1), lambda i: (0, 0))
    w2_spec = pl.BlockSpec((H1, H2), lambda i: (0, 0))
    b2_spec = pl.BlockSpec((1, H2), lambda i: (0, 0))
    w3_spec = pl.BlockSpec((H2, H3_PAD), lambda i: (0, 0))
    b3_spec = pl.BlockSpec((1, H3_PAD), lambda i: (0, 0))
    w4_spec = pl.BlockSpec((H3_PAD, OUT_PAD), lambda i: (0, 0))
    b4_spec = pl.BlockSpec((1, OUT_PAD), lambda i: (0, 0))
    out_spec = pl.BlockSpec((TB, OUT_PAD), lambda i: (i, 0))

    y_pad = pl.pallas_call(
        _mlp_kernel,
        out_shape=jax.ShapeDtypeStruct((Bp, OUT_PAD), jnp.bfloat16),
        grid=grid,
        in_specs=[x_spec,
                  w1_spec, b1_spec,
                  w2_spec, b2_spec,
                  w3_spec, b3_spec,
                  w4_spec, b4_spec],
        out_specs=out_spec,
        compiler_params=pltpu.CompilerParams(
            dimension_semantics=("parallel",)),
    )(xp,
      params["w1"], params["b1"],
      params["w2"], params["b2"],
      params["w3"], params["b3"],
      params["w4"], params["b4"])

    # Slice off batch padding and the 125 zero Q-value columns; return f32.
    return y_pad[:B, :OUT_DIM].astype(jnp.float32)


def init_params(key):
    """Deterministic parameter init (PyTorch Linear-style uniform bounds).

    Weights are stored transposed (in, out), cast to bf16, and padded to the
    kernel's aligned shapes (fc1 K -> 512, fc3 N / out K -> 128, out N -> 128).
    Biases stay f32 (padded where needed).  All padding is zero -> inert.
    """
    def linear(key, fan_in, fan_out):
        kw, kb = jax.random.split(key)
        bound = 1.0 / jnp.sqrt(jnp.float32(fan_in))
        w = jax.random.uniform(kw, (fan_in, fan_out), jnp.float32, -bound, bound)
        b = jax.random.uniform(kb, (1, fan_out), jnp.float32, -bound, bound)
        return w, b

    k1, k2, k3, k4 = jax.random.split(key, 4)
    w1, b1 = linear(k1, IN_DIM, H1)
    w2, b2 = linear(k2, H1, H2)
    w3, b3 = linear(k3, H2, H3)
    w4, b4 = linear(k4, H3, OUT_DIM)

    # fc1: pad K 507 -> 512 (zero rows; x is zero-padded so they contribute 0).
    w1p = jnp.zeros((IN_PAD, H1), jnp.float32).at[:IN_DIM, :].set(w1)
    # fc3: pad N 64 -> 128 (zero cols + zero bias -> h3[:, 64:] == 0 after ReLU).
    w3p = jnp.zeros((H2, H3_PAD), jnp.float32).at[:, :H3].set(w3)
    b3p = jnp.zeros((1, H3_PAD), jnp.float32).at[:, :H3].set(b3)
    # out: pad K 64 -> 128 (zero rows) and N 3 -> 128 (zero cols, sliced away).
    w4p = jnp.zeros((H3_PAD, OUT_PAD), jnp.float32).at[:H3, :OUT_DIM].set(w4)
    b4p = jnp.zeros((1, OUT_PAD), jnp.float32).at[:, :OUT_DIM].set(b4)

    return dict(
        w1=w1p.astype(jnp.bfloat16), b1=b1,
        w2=w2.astype(jnp.bfloat16), b2=b2,
        w3=w3p.astype(jnp.bfloat16), b3=b3p,
        w4=w4p.astype(jnp.bfloat16), b4=b4p,
    )


def _reference(x, p):
    """Pure-JAX f32 reference using the same (bf16-stored) padded weights."""
    xp = jnp.pad(x, ((0, 0), (0, IN_PAD - IN_DIM)))
    h = jnp.maximum(xp @ p["w1"].astype(jnp.float32) + p["b1"], 0.0)
    h = jnp.maximum(h @ p["w2"].astype(jnp.float32) + p["b2"], 0.0)
    h = jnp.maximum(h @ p["w3"].astype(jnp.float32) + p["b3"], 0.0)
    y = h @ p["w4"].astype(jnp.float32) + p["b4"]
    return y[:, :OUT_DIM]


if __name__ == "__main__":
    key = jax.random.PRNGKey(0)
    kp, kx = jax.random.split(key)

    params = init_params(kp)
    B = 8
    x = jax.random.normal(kx, (B, IN_DIM), jnp.float32)

    y = network_forward(x, params)
    jax.block_until_ready(y)

    y_ref = _reference(x, params)
    assert y.shape == (B, OUT_DIM)
    # bf16 activations on the MXU path + bf16 output store -> loose tolerance
    # vs the f32 reference (documented: Q-value deltas are at the ~1e-2 level).
    assert jnp.allclose(y, y_ref, atol=5e-2, rtol=5e-2)

    print("KERNEL_OK")
</pallas_src>

<mosaic_0001>
module attributes {stable_mosaic.version = 11 : i64} {
  func.func @_mlp_kernel(%arg0: i32, %arg1: memref<16x512xbf16, #tpu.memory_space<vmem>>, %arg2: memref<512x256xbf16, #tpu.memory_space<vmem>>, %arg3: memref<1x256xf32, #tpu.memory_space<vmem>>, %arg4: memref<256x128xbf16, #tpu.memory_space<vmem>>, %arg5: memref<1x128xf32, #tpu.memory_space<vmem>>, %arg6: memref<128x128xbf16, #tpu.memory_space<vmem>>, %arg7: memref<1x128xf32, #tpu.memory_space<vmem>>, %arg8: memref<128x128xbf16, #tpu.memory_space<vmem>>, %arg9: memref<1x128xf32, #tpu.memory_space<vmem>>, %arg10: memref<16x128xbf16, #tpu.memory_space<vmem>>) attributes {dimension_semantics = [#tpu.dimension_semantics<parallel>], iteration_bounds = array<i64: 1>, scalar_prefetch = 0 : i64, scratch_operands = 0 : i64, tpu.core_type = #tpu.core_type<tc>, window_params = [{transform_indices = @transform_0, window_bounds = array<i64: 16, 512>}, {pipeline_mode = #tpu.pipeline_mode<synchronous>, transform_indices = @transform_1, window_bounds = array<i64: 512, 256>}, {pipeline_mode = #tpu.pipeline_mode<synchronous>, transform_indices = @transform_2, window_bounds = array<i64: 1, 256>}, {pipeline_mode = #tpu.pipeline_mode<synchronous>, transform_indices = @transform_3, window_bounds = array<i64: 256, 128>}, {pipeline_mode = #tpu.pipeline_mode<synchronous>, transform_indices = @transform_4, window_bounds = array<i64: 1, 128>}, {pipeline_mode = #tpu.pipeline_mode<synchronous>, transform_indices = @transform_5, window_bounds = array<i64: 128, 128>}, {pipeline_mode = #tpu.pipeline_mode<synchronous>, transform_indices = @transform_6, window_bounds = array<i64: 1, 128>}, {pipeline_mode = #tpu.pipeline_mode<synchronous>, transform_indices = @transform_7, window_bounds = array<i64: 128, 128>}, {pipeline_mode = #tpu.pipeline_mode<synchronous>, transform_indices = @transform_8, window_bounds = array<i64: 1, 128>}, {transform_indices = @transform_9, window_bounds = array<i64: 16, 128>}]} {
    %c0 = arith.constant 0 : index
    %c0_0 = arith.constant 0 : index
    %0 = vector.load %arg1[%c0, %c0_0] : memref<16x512xbf16, #tpu.memory_space<vmem>>, vector<16x512xbf16>
    %c0_1 = arith.constant 0 : index
    %c0_2 = arith.constant 0 : index
    %1 = vector.load %arg2[%c0_1, %c0_2] : memref<512x256xbf16, #tpu.memory_space<vmem>>, vector<512x256xbf16>
    %cst = arith.constant dense<0.000000e+00> : vector<16x256xf32>
    %2 = tpu.matmul %0, %1, %cst {dimension_numbers = #tpu.dot_dimension_numbers<[1], [0], [0], [1], [0, 0, 1, 1], [], []>} : vector<16x512xbf16>, vector<512x256xbf16>, vector<16x256xf32> -> vector<16x256xf32>
    %c0_3 = arith.constant 0 : index
    %c0_4 = arith.constant 0 : index
    %3 = vector.load %arg3[%c0_3, %c0_4] : memref<1x256xf32, #tpu.memory_space<vmem>>, vector<1x256xf32>
    %4 = vector.broadcast %3 : vector<1x256xf32> to vector<16x256xf32>
    %5 = arith.addf %2, %4 : vector<16x256xf32>
    %cst_5 = arith.constant 0.000000e+00 : f32
    %6 = vector.broadcast %cst_5 : f32 to vector<16x256xf32>
    %7 = arith.maximumf %5, %6 : vector<16x256xf32>
    %8 = arith.truncf %7 : vector<16x256xf32> to vector<16x256xbf16>
    %c0_6 = arith.constant 0 : index
    %c0_7 = arith.constant 0 : index
    %9 = vector.load %arg4[%c0_6, %c0_7] : memref<256x128xbf16, #tpu.memory_space<vmem>>, vector<256x128xbf16>
    %cst_8 = arith.constant dense<0.000000e+00> : vector<16x128xf32>
    %10 = tpu.matmul %8, %9, %cst_8 {dimension_numbers = #tpu.dot_dimension_numbers<[1], [0], [0], [1], [0, 0, 1, 1], [], []>} : vector<16x256xbf16>, vector<256x128xbf16>, vector<16x128xf32> -> vector<16x128xf32>
    %c0_9 = arith.constant 0 : index
    %c0_10 = arith.constant 0 : index
    %11 = vector.load %arg5[%c0_9, %c0_10] : memref<1x128xf32, #tpu.memory_space<vmem>>, vector<1x128xf32>
    %12 = vector.broadcast %11 : vector<1x128xf32> to vector<16x128xf32>
    %13 = arith.addf %10, %12 : vector<16x128xf32>
    %cst_11 = arith.constant 0.000000e+00 : f32
    %14 = vector.broadcast %cst_11 : f32 to vector<16x128xf32>
    %15 = arith.maximumf %13, %14 : vector<16x128xf32>
    %16 = arith.truncf %15 : vector<16x128xf32> to vector<16x128xbf16>
    %c0_12 = arith.constant 0 : index
    %c0_13 = arith.constant 0 : index
    %17 = vector.load %arg6[%c0_12, %c0_13] : memref<128x128xbf16, #tpu.memory_space<vmem>>, vector<128x128xbf16>
    %cst_14 = arith.constant dense<0.000000e+00> : vector<16x128xf32>
    %18 = tpu.matmul %16, %17, %cst_14 {dimension_numbers = #tpu.dot_dimension_numbers<[1], [0], [0], [1], [0, 0, 1, 1], [], []>} : vector<16x128xbf16>, vector<128x128xbf16>, vector<16x128xf32> -> vector<16x128xf32>
    %c0_15 = arith.constant 0 : index
    %c0_16 = arith.constant 0 : index
    %19 = vector.load %arg7[%c0_15, %c0_16] : memref<1x128xf32, #tpu.memory_space<vmem>>, vector<1x128xf32>
    %20 = vector.broadcast %19 : vector<1x128xf32> to vector<16x128xf32>
    %21 = arith.addf %18, %20 : vector<16x128xf32>
    %cst_17 = arith.constant 0.000000e+00 : f32
    %22 = vector.broadcast %cst_17 : f32 to vector<16x128xf32>
    %23 = arith.maximumf %21, %22 : vector<16x128xf32>
    %24 = arith.truncf %23 : vector<16x128xf32> to vector<16x128xbf16>
    %c0_18 = arith.constant 0 : index
    %c0_19 = arith.constant 0 : index
    %25 = vector.load %arg8[%c0_18, %c0_19] : memref<128x128xbf16, #tpu.memory_space<vmem>>, vector<128x128xbf16>
    %cst_20 = arith.constant dense<0.000000e+00> : vector<16x128xf32>
    %26 = tpu.matmul %24, %25, %cst_20 {dimension_numbers = #tpu.dot_dimension_numbers<[1], [0], [0], [1], [0, 0, 1, 1], [], []>} : vector<16x128xbf16>, vector<128x128xbf16>, vector<16x128xf32> -> vector<16x128xf32>
    %c0_21 = arith.constant 0 : index
    %c0_22 = arith.constant 0 : index
    %27 = vector.load %arg9[%c0_21, %c0_22] : memref<1x128xf32, #tpu.memory_space<vmem>>, vector<1x128xf32>
    %28 = vector.broadcast %27 : vector<1x128xf32> to vector<16x128xf32>
    %29 = arith.addf %26, %28 : vector<16x128xf32>
    %30 = arith.truncf %29 : vector<16x128xf32> to vector<16x128xbf16>
    %c0_23 = arith.constant 0 : index
    %c0_24 = arith.constant 0 : index
    %31 = vector.load %arg10[%c0_23, %c0_24] : memref<16x128xbf16, #tpu.memory_space<vmem>>, vector<16x128xbf16>
    tpu.vector_store %arg10[%c0_23, %c0_24], %30 {strides = array<i32>} : memref<16x128xbf16, #tpu.memory_space<vmem>>, vector<16x128xbf16>,
    return
  }
  func.func @transform_0(%arg0: i32) -> (i32, i32) {
    %c0_i32 = arith.constant 0 : i32
    %c0_i32_0 = arith.constant 0 : i32
    return %arg0, %c0_i32 : i32, i32
  }
  func.func @transform_1(%arg0: i32) -> (i32, i32) {
    %c0_i32 = arith.constant 0 : i32
    %c0_i32_0 = arith.constant 0 : i32
    %c0_i32_1 = arith.constant 0 : i32
    return %c0_i32, %c0_i32_0 : i32, i32
  }
  func.func @transform_2(%arg0: i32) -> (i32, i32) {
    %c0_i32 = arith.constant 0 : i32
    %c0_i32_0 = arith.constant 0 : i32
    %c0_i32_1 = arith.constant 0 : i32
    return %c0_i32, %c0_i32_0 : i32, i32
  }
  func.func @transform_3(%arg0: i32) -> (i32, i32) {
    %c0_i32 = arith.constant 0 : i32
    %c0_i32_0 = arith.constant 0 : i32
    %c0_i32_1 = arith.constant 0 : i32
    return %c0_i32, %c0_i32_0 : i32, i32
  }
  func.func @transform_4(%arg0: i32) -> (i32, i32) {
    %c0_i32 = arith.constant 0 : i32
    %c0_i32_0 = arith.constant 0 : i32
    %c0_i32_1 = arith.constant 0 : i32
    return %c0_i32, %c0_i32_0 : i32, i32
  }
  func.func @transform_5(%arg0: i32) -> (i32, i32) {
    %c0_i32 = arith.constant 0 : i32
    %c0_i32_0 = arith.constant 0 : i32
    %c0_i32_1 = arith.constant 0 : i32
    return %c0_i32, %c0_i32_0 : i32, i32
  }
  func.func @transform_6(%arg0: i32) -> (i32, i32) {
    %c0_i32 = arith.constant 0 : i32
    %c0_i32_0 = arith.constant 0 : i32
    %c0_i32_1 = arith.constant 0 : i32
    return %c0_i32, %c0_i32_0 : i32, i32
  }
  func.func @transform_7(%arg0: i32) -> (i32, i32) {
    %c0_i32 = arith.constant 0 : i32
    %c0_i32_0 = arith.constant 0 : i32
    %c0_i32_1 = arith.constant 0 : i32
    return %c0_i32, %c0_i32_0 : i32, i32
  }
  func.func @transform_8(%arg0: i32) -> (i32, i32) {
    %c0_i32 = arith.constant 0 : i32
    %c0_i32_0 = arith.constant 0 : i32
    %c0_i32_1 = arith.constant 0 : i32
    return %c0_i32, %c0_i32_0 : i32, i32
  }
  func.func @transform_9(%arg0: i32) -> (i32, i32) {
    %c0_i32 = arith.constant 0 : i32
    %c0_i32_0 = arith.constant 0 : i32
    return %arg0, %c0_i32 : i32, i32
  }
}

</mosaic_0001>

<bundles_post_ra>
// kernel: tpu_custom_call.1
= control target key start
LH: loop header
LB: loop body
LE: loop exit
PB: predicated region body
PF: predicated region fallthrough
CT: control target
= control target key end

     0   :  { %14 = vsyncpa [#allocation3], 0  ;;  %s1717_s0 = inlined_call_operand.hbm [shape: bf16[16,512], index: 0, kind: input, shape index: {}]   ;;  %s1718_s1 = inlined_call_operand.hbm [shape: bf16[512,256], index: 1, kind: input, shape index: {}]   ;;  %s1719_s2 = inlined_call_operand.vmem [shape: f32[1,256], index: 2, kind: input, shape index: {}]   ;;  %s1720_s3 = inlined_call_operand.hbm [shape: bf16[256,128], index: 3, kind: input, shape index: {}]   ;;  %s1721_s4 = inlined_call_operand.vmem [shape: f32[1,128], index: 4, kind: input, shape index: {}]   ;;  %s1722_s5 = inlined_call_operand.hbm [shape: bf16[128,128], index: 5, kind: input, shape index: {}]   ;;  %s1723_s6 = inlined_call_operand.vmem [shape: f32[1,128], index: 6, kind: input, shape index: {}]   ;;  %s1724_s7 = inlined_call_operand.hbm [shape: bf16[128,128], index: 7, kind: input, shape index: {}]   ;;  %s1725_s8 = inlined_call_operand.vmem [shape: f32[1,128], index: 8, kind: input, shape index: {}]   ;;  %s1726_s9 = inlined_call_operand.hbm [shape: bf16[16,128], index: 9, kind: output, shape index: {}]  }
   0x1   :  { %15 = vsyncpa [#allocation6], 0 }
   0x2   :  { %16 = vsyncpa [#allocation9], 0 }
   0x3   :  { %17 = vsyncpa [#allocation4], 0  ;;  %s1537_s30 = smov [#allocation5]   ;;  %s1397_s13 = scalar_lea.hbm %s1718_s1, 8192 }
   0x4   :  { %s35_s10 = sshll.u32 %s1537_s30, 4  ;;  %p1398_p0 = scmp.ne.s32.totalorder %s1718_s1, %s1397_s13  ;;  %s36_s10 = int_to_ptr.vmem [resolvable:$true] %s35_s10 }
   0x5   :  { %p1401_p1 = scmp.lt.u32.totalorder %s1397_s13, %s1718_s1 }
   0x7   :  { %p1403_p2 = pnand %p1401_p1, %p1398_p0 }
   0x9   :  { %1406 = shalt.err (!%p1403_p2)
}
   0xa   :  { %s1407_s18 = scalar_lea.vmem %s36_s10, 8192  ;;  %p1412_p4 = scmp.lt.s32.totalorder %s36_s10, %s36_s10 }
   0xb   :  { %p1408_p3 = scmp.ne.s32.totalorder %s36_s10, %s1407_s18  ;;  %p1413_p5 = scmp.lt.s32.totalorder %s1407_s18, %s1407_s18 }
   0xd   :  { %p1414_p6 = por %p1413_p5, %p1412_p4 }
   0xf   :  { %p1415_p7 = pnand %p1414_p6, %p1408_p3 }
  0x11   :  { %1418 = shalt.err (!%p1415_p7)
}
  0x12   :  { %s1538_s19 = smov 128   ;;  %s1539_s20 = smov 8  }
  0x13   :  { %41 = dma.hbm_to_vmem [thread:$0]  %s1718_s1, 8192, %s36_s10, [#allocation6], %s1538_s19, %s1538_s19, %s1539_s20  }
  0x14   :  { %s1540_s23 = smov [#allocation8]   ;;  %s1541_s25 = smov [#allocation2]  }
  0x15   :  { %s63_s24 = sshll.u32 %s1540_s23, 4  ;;  %s23_s26 = sshll.u32 %s1541_s25, 4  ;;  %s64_s24 = int_to_ptr.vmem [resolvable:$true] %s63_s24  ;;  %s24_s26 = int_to_ptr.vmem [resolvable:$true] %s23_s26 }
  0x16   :  { %s1419_s29 = scalar_lea.hbm %s1722_s5, 1024 }
  0x17   :  { %p1420_p8 = scmp.ne.s32.totalorder %s1722_s5, %s1419_s29  ;;  %p1423_p9 = scmp.lt.u32.totalorder %s1419_s29, %s1722_s5 }
  0x19   :  { %p1425_p10 = pnand %p1423_p9, %p1420_p8 }
  0x1b   :  { %1428 = shalt.err (!%p1425_p10)
}
  0x1c   :  { %s1429_s1 = scalar_lea.vmem %s64_s24, 1024  ;;  %p1434_p12 = scmp.lt.s32.totalorder %s64_s24, %s64_s24 }
  0x1d   :  { %p1430_p11 = scmp.ne.s32.totalorder %s64_s24, %s1429_s1  ;;  %p1435_p13 = scmp.lt.s32.totalorder %s1429_s1, %s1429_s1 }
  0x1f   :  { %p1436_p0 = por %p1435_p13, %p1434_p12 }
  0x21   :  { %p1437_p1 = pnand %p1436_p0, %p1430_p11 }
  0x23   :  { %1440 = shalt.err (!%p1437_p1)
}
  0x24   :  { %s1542_s10 = smov 64   ;;  %s1543_s14 = smov 4  }
  0x25   :  { %69 = dma.hbm_to_vmem [thread:$0]  %s1722_s5, 1024, %s64_s24, [#allocation9], %s1542_s10, %s1542_s10, %s1543_s14  }
  0x26   :  { %s1441_s19 = scalar_lea.hbm %s1717_s0, 512 }
  0x27   :  { %p1442_p2 = scmp.ne.s32.totalorder %s1717_s0, %s1441_s19  ;;  %p1445_p3 = scmp.lt.u32.totalorder %s1441_s19, %s1717_s0 }
  0x29   :  { %p1447_p4 = pnand %p1445_p3, %p1442_p2 }
  0x2b   :  { %1450 = shalt.err (!%p1447_p4)
}
  0x2c   :  { %s1451_s25 = scalar_lea.vmem %s24_s26, 512  ;;  %p1456_p6 = scmp.lt.s32.totalorder %s24_s26, %s24_s26 }
  0x2d   :  { %p1452_p5 = scmp.ne.s32.totalorder %s24_s26, %s1451_s25  ;;  %p1457_p7 = scmp.lt.s32.totalorder %s1451_s25, %s1451_s25 }
  0x2f   :  { %p1458_p8 = por %p1457_p7, %p1456_p6 }
  0x31   :  { %p1459_p9 = pnand %p1458_p8, %p1452_p5 }
  0x33   :  { %1462 = shalt.err (!%p1459_p9)
}
  0x34   :  { %s1544_s5 = smov 256   ;;  %s1545_s24 = smov 16  }
  0x35   :  { %29 = dma.hbm_to_vmem [thread:$0]  %s1717_s0, 512, %s24_s26, [#allocation3], %s1544_s5, %s1544_s5, %s1545_s24  }
  0x36   :  { %s1546_s29 = smov [#allocation7]   ;;  %s1547_s11 = smov [#allocation10]  }
  0x37   :  { %s49_s30 = sshll.u32 %s1546_s29, 4  ;;  %s77_s12 = sshll.u32 %s1547_s11, 4  ;;  %s50_s30 = int_to_ptr.vmem [resolvable:$true] %s49_s30  ;;  %s78_s12 = int_to_ptr.vmem [resolvable:$true] %s77_s12 }
  0x38   :  { %s1463_s15 = scalar_lea.hbm %s1720_s3, 2048 }
  0x39   :  { %p1464_p10 = scmp.ne.s32.totalorder %s1720_s3, %s1463_s15  ;;  %p1467_p11 = scmp.lt.u32.totalorder %s1463_s15, %s1720_s3 }
  0x3b   :  { %p1469_p12 = pnand %p1467_p11, %p1464_p10 }
  0x3d   :  { %1472 = shalt.err (!%p1469_p12)
}
  0x3e   :  { %s1473_s0 = scalar_lea.vmem %s50_s30, 2048  ;;  %p1478_p0 = scmp.lt.s32.totalorder %s50_s30, %s50_s30 }
  0x3f   :  { %p1474_p13 = scmp.ne.s32.totalorder %s50_s30, %s1473_s0  ;;  %p1479_p1 = scmp.lt.s32.totalorder %s1473_s0, %s1473_s0 }
  0x41   :  { %p1480_p2 = por %p1479_p1, %p1478_p0 }
  0x43   :  { %p1481_p3 = pnand %p1480_p2, %p1474_p13 }
  0x45   :  { %1484 = shalt.err (!%p1481_p3)
}
  0x46   :  { %55 = dma.hbm_to_vmem [thread:$0]  %s1720_s3, 2048, %s50_s30, [#allocation6], %s1542_s10, %s1542_s10, %s1543_s14  }
  0x47   :  { %s1485_s23 = scalar_lea.hbm %s1724_s7, 1024 }
  0x48   :  { %p1486_p4 = scmp.ne.s32.totalorder %s1724_s7, %s1485_s23  ;;  %p1489_p5 = scmp.lt.u32.totalorder %s1485_s23, %s1724_s7 }
  0x4a   :  { %p1491_p6 = pnand %p1489_p5, %p1486_p4 }
  0x4c   :  { %1494 = shalt.err (!%p1491_p6)
}
  0x4d   :  { %s1495_s28 = scalar_lea.vmem %s78_s12, 1024  ;;  %p1500_p8 = scmp.lt.s32.totalorder %s78_s12, %s78_s12 }
  0x4e   :  { %p1496_p7 = scmp.ne.s32.totalorder %s78_s12, %s1495_s28  ;;  %p1501_p9 = scmp.lt.s32.totalorder %s1495_s28, %s1495_s28 }
  0x50   :  { %p1502_p10 = por %p1501_p9, %p1500_p8 }
  0x52   :  { %p1503_p11 = pnand %p1502_p10, %p1496_p7 }
  0x54   :  { %1506 = shalt.err (!%p1503_p11)
}
  0x55   :  { %83 = dma.hbm_to_vmem [thread:$0]  %s1724_s7, 1024, %s78_s12, [#allocation9], %s1542_s10, %s1542_s10, %s1543_s14  }
  0x56   :  { %1529 = dma.done.wait [#allocation3], 512  }
  0x57   :  { %1530 = vsyncadd [#allocation3], 4294966784 }
  0x58   :  { %1531 = dma.done.wait [#allocation6], 10240  }
  0x59   :  { %1532 = vsyncadd [#allocation6], 4294957056 }
  0x5a   :  { %1533 = dma.done.wait [#allocation9], 2048  }
  0x5b   :  { %1534 = vsyncadd [#allocation9], 4294965248  ;;  %v1263_v0 = vld [vmem:[#allocation5 + $0x4] ss:$8 sps:$4 sm:$0xff]   ;;  %v1265_v1 = vld [vmem:[#allocation5] ss:$8 sps:$4 sm:$0xff]  }
  0x5c   :  { %522 = vmatprep.subr.bf16.mxu0 %v1263_v0  ;;  %v1266_v2 = vld [vmem:[#allocation5 + $0x14] ss:$8 sps:$4 sm:$0xff]   ;;  %v1268_v3 = vld [vmem:[#allocation5 + $0x10] ss:$8 sps:$4 sm:$0xff]   ;;  %v1269_v4 = vld [vmem:[#allocation5 + $0x24] ss:$8 sps:$4 sm:$0xff]  }
  0x5d   :  { %523 = vmatpush1.bf16.msra.mxu0 %v1265_v1  ;;  %v1271_v5 = vld [vmem:[#allocation5 + $0x20] ss:$8 sps:$4 sm:$0xff]   ;;  %v1272_v6 = vld [vmem:[#allocation5 + $0x34] ss:$8 sps:$4 sm:$0xff]   ;;  %v1274_v7 = vld [vmem:[#allocation5 + $0x30] ss:$8 sps:$4 sm:$0xff]  }
  0x5e   :  { %524 = vmatprep.subr.bf16.mxu0 %v1266_v2  ;;  %v1275_v8 = vld [vmem:[#allocation5 + $0x44] ss:$8 sps:$4 sm:$0xff]   ;;  %v1277_v9 = vld [vmem:[#allocation5 + $0x40] ss:$8 sps:$4 sm:$0xff]   ;;  %v1278_v10 = vld [vmem:[#allocation5 + $0x54] ss:$8 sps:$4 sm:$0xff]  }
  0x5f   :  { %v1280_v11 = vld [vmem:[#allocation5 + $0x50] ss:$8 sps:$4 sm:$0xff]   ;;  %v1281_v12 = vld [vmem:[#allocation5 + $0x64] ss:$8 sps:$4 sm:$0xff]   ;;  %v1283_v14 = vld [vmem:[#allocation5 + $0x60] ss:$8 sps:$4 sm:$0xff]  }
  0x60   :  { %v1313_v13 = vld [vmem:[#allocation2 + $0x4] ss:$16 sps:$4 sm:$0xff]   ;;  %v1286_v16 = vld [vmem:[#allocation5 + $0x70] ss:$8 sps:$4 sm:$0xff]   ;;  %v1289_v18 = vld [vmem:[#allocation5 + $0x80] ss:$8 sps:$4 sm:$0xff]  }
  0x61   :  { %525 = vmatpush1.bf16.msra.mxu0 %v1268_v3  ;;  %v1284_v15 = vld [vmem:[#allocation5 + $0x74] ss:$8 sps:$4 sm:$0xff]   ;;  %554 = vmatprep.mubr.bf16.mxu0 %v1313_v13  ;;  %v1287_v17 = vld [vmem:[#allocation5 + $0x84] ss:$8 sps:$4 sm:$0xff]   ;;  %v1292_v20 = vld [vmem:[#allocation5 + $0x90] ss:$8 sps:$4 sm:$0xff]  }
  0x62   :  { %526 = vmatprep.subr.bf16.mxu0 %v1269_v4  ;;  %v1290_v19 = vld [vmem:[#allocation5 + $0x94] ss:$8 sps:$4 sm:$0xff]   ;;  %v1293_v21 = vld [vmem:[#allocation5 + $0xa4] ss:$8 sps:$4 sm:$0xff]   ;;  %v1295_v22 = vld [vmem:[#allocation5 + $0xa0] ss:$8 sps:$4 sm:$0xff]  }
  0x63   :  { %v1296_v23 = vld [vmem:[#allocation5 + $0xb4] ss:$8 sps:$4 sm:$0xff]   ;;  %v1298_v24 = vld [vmem:[#allocation5 + $0xb0] ss:$8 sps:$4 sm:$0xff]   ;;  %v1299_v25 = vld [vmem:[#allocation5 + $0xc4] ss:$8 sps:$4 sm:$0xff]  }
  0x64   :  { %v1301_v26 = vld [vmem:[#allocation5 + $0xc0] ss:$8 sps:$4 sm:$0xff]   ;;  %v1302_v27 = vld [vmem:[#allocation5 + $0xd4] ss:$8 sps:$4 sm:$0xff]   ;;  %v1304_v33 = vld [vmem:[#allocation5 + $0xd0] ss:$8 sps:$4 sm:$0xff]  }
  0x65   :  { %527 = vmatpush1.bf16.msra.mxu0 %v1271_v5  ;;  %v1365_v28 = vld [vmem:[#allocation7 + $0x40] sm:$0xff]   ;;  %v1367_v30 = vld [vmem:[#allocation7 + $0x48] sm:$0xff]   ;;  %v1369_v32 = vld [vmem:[#allocation7 + $0x50] sm:$0xff]   ;;  %vm1549_vm0 = vmmov 0   ;;  %s1550_s15 = smov [#allocation11]  }
  0x66   :  { %528 = vmatprep.subr.bf16.mxu0 %v1272_v6  ;;  %v1366_v29 = vld [vmem:[#allocation7] sm:$0xff]   ;;  %1161 = vmatprep.subr.bf16.mxu1 %v1365_v28  ;;  %v1368_v31 = vld [vmem:[#allocation7 + $0x8] sm:$0xff]   ;;  %v1370_v36 = vld [vmem:[#allocation7 + $0x10] sm:$0xff]   ;;  %s1035_s16 = sshll.u32 %s1550_s15, 4  ;;  %s1036_s16 = int_to_ptr.vmem [resolvable:$true] %s1035_s16 }
  0x67   :  { %1162 = vmatpush3.bf16.msra.mxu1 %v1366_v29  ;;  %v1305_v34 = vld [vmem:[#allocation5 + $0xe4] ss:$8 sps:$4 sm:$0xff]   ;;  %v1307_v35 = vld [vmem:[#allocation5 + $0xe0] ss:$8 sps:$4 sm:$0xff]   ;;  %v1371_v37 = vld [vmem:[#allocation7 + $0x58] sm:$0xff]   ;;  %p1512_p13 = scmp.lt.s32.totalorder %s1036_s16, %s1036_s16 }
  0x68   :  { %1163 = vmatprep.subr.bf16.mxu1 %v1367_v30  ;;  %v1308_v38 = vld [vmem:[#allocation5 + $0xf4] ss:$8 sps:$4 sm:$0xff]   ;;  %v1373_v40 = vld [vmem:[#allocation7 + $0x60] sm:$0xff]   ;;  %v1310_v41 = vld [vmem:[#allocation5 + $0xf0] ss:$8 sps:$4 sm:$0xff]  }
  0x69   :  { %529 = vmatpush1.bf16.msra.mxu0 %v1274_v7  ;;  %v1372_v39 = vld [vmem:[#allocation7 + $0x18] sm:$0xff]   ;;  %v1316_v42 = vld [vmem:[#allocation5 + $0x104] ss:$8 sps:$4 sm:$0xff]   ;;  %v1311_v44 = vld [vmem:[#allocation2] ss:$16 sps:$4 sm:$0xff]  }
  0x6a   :  { %530 = vmatprep.subr.bf16.mxu0 %v1275_v8  ;;  %v1374_v43 = vld [vmem:[#allocation7 + $0x20] sm:$0xff]   ;;  %v1375_v45 = vld [vmem:[#allocation7 + $0x68] sm:$0xff]   ;;  %v1319_v48 = vld [vmem:[#allocation5 + $0x114] ss:$8 sps:$4 sm:$0xff]  }
  0x6b   :  { %1164 = vmatpush3.bf16.msra.mxu1 %v1368_v31  ;;  %v1314_v46 = vld [vmem:[#allocation5 + $0x100] ss:$8 sps:$4 sm:$0xff]   ;;  %v1364_v47 = vld [vmem:[#allocation2 + $0xc] ss:$16 sps:$4 sm:$0xff]   ;;  %v1317_v49 = vld [vmem:[#allocation5 + $0x110] ss:$8 sps:$4 sm:$0xff]  }
  0x6c   :  { %1165 = vmatprep.subr.bf16.mxu1 %v1369_v32  ;;  %v1322_v50 = vld [vmem:[#allocation5 + $0x124] ss:$8 sps:$4 sm:$0xff]   ;;  %v1320_v51 = vld [vmem:[#allocation5 + $0x120] ss:$8 sps:$4 sm:$0xff]   ;;  %v1325_v52 = vld [vmem:[#allocation5 + $0x134] ss:$8 sps:$4 sm:$0xff]  }
  0x6d   :  { %531 = vmatpush1.bf16.msra.mxu0 %v1277_v9  ;;  %v1323_v53 = vld [vmem:[#allocation5 + $0x130] ss:$8 sps:$4 sm:$0xff]   ;;  %v1328_v54 = vld [vmem:[#allocation5 + $0x144] ss:$8 sps:$4 sm:$0xff]   ;;  %v1326_v55 = vld [vmem:[#allocation5 + $0x140] ss:$8 sps:$4 sm:$0xff]  }
  0x6e   :  { %532 = vmatprep.subr.bf16.mxu0 %v1278_v10  ;;  %v1331_v56 = vld [vmem:[#allocation5 + $0x154] ss:$8 sps:$4 sm:$0xff]   ;;  %v1329_v57 = vld [vmem:[#allocation5 + $0x150] ss:$8 sps:$4 sm:$0xff]   ;;  %v1334_v58 = vld [vmem:[#allocation5 + $0x164] ss:$8 sps:$4 sm:$0xff]  }
  0x6f   :  { %1166 = vmatpush3.bf16.msra.mxu1 %v1370_v36  ;;  %v1332_v59 = vld [vmem:[#allocation5 + $0x160] ss:$8 sps:$4 sm:$0xff]   ;;  %v1337_v60 = vld [vmem:[#allocation5 + $0x174] ss:$8 sps:$4 sm:$0xff]   ;;  %v1335_v61 = vld [vmem:[#allocation5 + $0x170] ss:$8 sps:$4 sm:$0xff]  }
  0x70   :  { %1167 = vmatprep.subr.bf16.mxu1 %v1371_v37  ;;  %v1340_v62 = vld [vmem:[#allocation5 + $0x184] ss:$8 sps:$4 sm:$0xff]   ;;  %v1338_v63 = vld [vmem:[#allocation5 + $0x180] ss:$8 sps:$4 sm:$0xff]   ;;  %v1343_v0 = vld [vmem:[#allocation5 + $0x194] ss:$8 sps:$4 sm:$0xff]  }
  0x71   :  { %533 = vmatpush1.bf16.msra.mxu0 %v1280_v11  ;;  %v1341_v1 = vld [vmem:[#allocation5 + $0x190] ss:$8 sps:$4 sm:$0xff]   ;;  %v1346_v2 = vld [vmem:[#allocation5 + $0x1a4] ss:$8 sps:$4 sm:$0xff]   ;;  %v1344_v3 = vld [vmem:[#allocation5 + $0x1a0] ss:$8 sps:$4 sm:$0xff]  }
  0x72   :  { %534 = vmatprep.subr.bf16.mxu0 %v1281_v12  ;;  %v1349_v4 = vld [vmem:[#allocation5 + $0x1b4] ss:$8 sps:$4 sm:$0xff]   ;;  %v1347_v5 = vld [vmem:[#allocation5 + $0x1b0] ss:$8 sps:$4 sm:$0xff]   ;;  %v1352_v6 = vld [vmem:[#allocation5 + $0x1c4] ss:$8 sps:$4 sm:$0xff]  }
  0x73   :  { %1168 = vmatpush3.bf16.msra.mxu1 %v1372_v39  ;;  %v1350_v7 = vld [vmem:[#allocation5 + $0x1c0] ss:$8 sps:$4 sm:$0xff]   ;;  %v1355_v8 = vld [vmem:[#allocation5 + $0x1d4] ss:$8 sps:$4 sm:$0xff]   ;;  %v1353_v9 = vld [vmem:[#allocation5 + $0x1d0] ss:$8 sps:$4 sm:$0xff]  }
  0x74   :  { %1169 = vmatprep.subr.bf16.mxu1 %v1373_v40  ;;  %v1358_v10 = vld [vmem:[#allocation5 + $0x1e4] ss:$8 sps:$4 sm:$0xff]   ;;  %v1356_v11 = vld [vmem:[#allocation5 + $0x1e0] ss:$8 sps:$4 sm:$0xff]   ;;  %v1361_v12 = vld [vmem:[#allocation5 + $0x1f4] ss:$8 sps:$4 sm:$0xff]  }
  0x75   :  { %535 = vmatpush1.bf16.msra.mxu0 %v1283_v14  ;;  %v1359_v13 = vld [vmem:[#allocation5 + $0x1f0] ss:$8 sps:$4 sm:$0xff]  }
  0x76   :  { %536 = vmatprep.subr.bf16.mxu0 %v1284_v15  ;;  %v1362_v14 = vld [vmem:[#allocation2 + $0x8] ss:$16 sps:$4 sm:$0xff]  }
  0x77   :  { %1170 = vmatpush3.bf16.msra.mxu1 %v1374_v43  ;;  %v1376_v15 = vld [vmem:[#allocation7 + $0x28] sm:$0xff]  }
  0x78   :  { %1171 = vmatprep.subr.bf16.mxu1 %v1375_v45  ;;  %v1382_v43 = vld [vmem:[#allocation8 + $0x8] sm:$0xff]   ;;  %v1384_v45 = vld [vmem:[#allocation8 + $0x18] sm:$0xff]  }
  0x79   :  { %537 = vmatpush1.bf16.msra.mxu0 %v1286_v16  ;;  %v1377_v16 = vld [vmem:[#allocation7 + $0x70] sm:$0xff]  }
  0x7a   :  { %538 = vmatprep.subr.bf16.mxu0 %v1287_v17  ;;  %v1378_v17 = vld [vmem:[#allocation7 + $0x30] sm:$0xff]  }
  0x7b   :  { %1172 = vmatpush3.bf16.msra.mxu1 %v1376_v15 }
  0x7c   :  { %1173 = vmatprep.subr.bf16.mxu1 %v1377_v16  ;;  %v1143_v16 = vld [vmem:[%s1725_s8] ss:$0 sm:$0xff] }
  0x7d   :  { %539 = vmatpush1.bf16.msra.mxu0 %v1289_v18  ;;  %v1379_v18 = vld [vmem:[#allocation7 + $0x78] sm:$0xff]  }
  0x7e   :  { %540 = vmatprep.subr.bf16.mxu0 %v1290_v19  ;;  %v1380_v19 = vld [vmem:[#allocation7 + $0x38] sm:$0xff]  }
  0x7f   :  { %1174 = vmatpush3.bf16.msra.mxu1 %v1378_v17 }
  0x80   :  { %1175 = vmatprep.subr.bf16.mxu1 %v1379_v18 }
  0x81   :  { %541 = vmatpush1.bf16.msra.mxu0 %v1292_v20  ;;  %v1548_v20 = vmov 0.0  }
  0x82   :  { %542 = vmatprep.subr.bf16.mxu0 %v1293_v21  ;;  %v172_v21 = vlaneseq }
  0x83   :  { %1176 = vmatpush3.bf16.msra.mxu1 %v1380_v19 }
  0x84   :  { %1201 = vmatprep.subr.bf16.mxu1 %v1548_v20 }
  0x85   :  { %543 = vmatpush1.bf16.msra.mxu0 %v1295_v22  ;;  %v173_v22 = vshrl.u32 %v172_v21, 7 }
  0x86   :  { %544 = vmatprep.subr.bf16.mxu0 %v1296_v23 }
  0x87   :  { %v174_v23 = vsub.s32 0, %v173_v22 }
  0x89   :  { %545 = vmatpush1.bf16.msra.mxu0 %v1298_v24  ;;  %v170_v24 = vld [vmem:[%s1719_s2] sm:$0x3] }
  0x8a   :  { %546 = vmatprep.subr.bf16.mxu0 %v1299_v25  ;;  %v178_v25 = vsub.s32 1, %v173_v22 }
  0x8d   :  { %547 = vmatpush1.bf16.msra.mxu0 %v1301_v26  ;;  %v175_v26 = vrot.slane %v170_v24, %v174_v23 }
  0x8e   :  { %548 = vmatprep.subr.bf16.mxu0 %v1302_v27  ;;  %v179_v27 = vrot.slane %v170_v24, %v178_v25 }
  0x91   :  { %549 = vmatpush1.bf16.msra.mxu0 %v1304_v33 }
  0x92   :  { %550 = vmatprep.subr.bf16.mxu0 %v1305_v34 }
  0x95   :  { %551 = vmatpush1.bf16.msra.mxu0 %v1307_v35 }
  0x96   :  { %552 = vmatprep.subr.bf16.mxu0 %v1308_v38 }
  0x99   :  { %553 = vmatpush1.bf16.msra.mxu0 %v1310_v41 }
  0x9a   :  { %565 = vmatprep.subr.bf16.mxu0 %v1316_v42  ;;  %v1381_v42 = vld [vmem:[#allocation8] sm:$0xff]  }
  0x9c   :  { %555 = vmatmul.mubr.bf16.vlgmr.msra.gmra.mrb[0].mxu0 %v1311_v44  ;;  %v1383_v44 = vld [vmem:[#allocation8 + $0x10] sm:$0xff]  }
  0x9d   :  { %566 = vmatpush1.bf16.msra.mxu0 %v1314_v46  ;;  %597 = vmatprep.mubr.bf16.mxu0 %v1364_v47  ;;  %v1385_v46 = vld [vmem:[#allocation8 + $0x20] sm:$0xff]   ;;  %v1386_v47 = vld [vmem:[#allocation8 + $0x28] sm:$0xff]  }
  0x9e   :  { %567 = vmatprep.subr.bf16.mxu0 %v1319_v48  ;;  %v1387_v48 = vld [vmem:[#allocation8 + $0x30] sm:$0xff]  }
  0xa1   :  { %568 = vmatpush1.bf16.msra.mxu0 %v1317_v49  ;;  %v1388_v49 = vld [vmem:[#allocation8 + $0x38] sm:$0xff]  }
  0xa2   :  { %569 = vmatprep.subr.bf16.mxu0 %v1322_v50 }
  0xa5   :  { %570 = vmatpush1.bf16.msra.mxu0 %v1320_v51  ;;  %v1117_v51 = vld [vmem:[%s1721_s4] ss:$0 sm:$0xff] }
  0xa6   :  { %571 = vmatprep.subr.bf16.mxu0 %v1325_v52 }
  0xa9   :  { %572 = vmatpush1.bf16.msra.mxu0 %v1323_v53 }
  0xaa   :  { %573 = vmatprep.subr.bf16.mxu0 %v1328_v54 }
  0xad   :  { %574 = vmatpush1.bf16.msra.mxu0 %v1326_v55 }
  0xae   :  { %575 = vmatprep.subr.bf16.mxu0 %v1331_v56 }
  0xb1   :  { %576 = vmatpush1.bf16.msra.mxu0 %v1329_v57 }
  0xb2   :  { %577 = vmatprep.subr.bf16.mxu0 %v1334_v58 }
  0xb5   :  { %578 = vmatpush1.bf16.msra.mxu0 %v1332_v59 }
  0xb6   :  { %579 = vmatprep.subr.bf16.mxu0 %v1337_v60 }
  0xb9   :  { %580 = vmatpush1.bf16.msra.mxu0 %v1335_v61  ;;  %v1389_v61 = vld [vmem:[#allocation10] sm:$0xff]  }
  0xba   :  { %581 = vmatprep.subr.bf16.mxu0 %v1340_v62 }
  0xbd   :  { %582 = vmatpush1.bf16.msra.mxu0 %v1338_v63  ;;  %v1390_v63 = vld [vmem:[#allocation10 + $0x8] sm:$0xff]  }
  0xbe   :  { %583 = vmatprep.subr.bf16.mxu0 %v1343_v0  ;;  %v1391_v0 = vld [vmem:[#allocation10 + $0x10] sm:$0xff]  }
  0xc1   :  { %584 = vmatpush1.bf16.msra.mxu0 %v1341_v1  ;;  %v1392_v1 = vld [vmem:[#allocation10 + $0x18] sm:$0xff]  }
  0xc2   :  { %585 = vmatprep.subr.bf16.mxu0 %v1346_v2  ;;  %v1393_v2 = vld [vmem:[#allocation10 + $0x20] sm:$0xff]  }
  0xc5   :  { %586 = vmatpush1.bf16.msra.mxu0 %v1344_v3  ;;  %v1394_v3 = vld [vmem:[#allocation10 + $0x28] sm:$0xff]  }
  0xc6   :  { %587 = vmatprep.subr.bf16.mxu0 %v1349_v4  ;;  %v1395_v4 = vld [vmem:[#allocation10 + $0x30] sm:$0xff]  }
  0xc9   :  { %588 = vmatpush1.bf16.msra.mxu0 %v1347_v5  ;;  %v1396_v5 = vld [vmem:[#allocation10 + $0x38] sm:$0xff]  }
  0xca   :  { %589 = vmatprep.subr.bf16.mxu0 %v1352_v6  ;;  %v1134_v6 = vld [vmem:[%s1723_s6] ss:$0 sm:$0xff]  ;;  %s1507_s6 = scalar_lea.vmem %s1036_s16, 128 }
  0xcb   :  { %p1508_p12 = scmp.ne.s32.totalorder %s1036_s16, %s1507_s6  ;;  %p1513_p0 = scmp.lt.s32.totalorder %s1507_s6, %s1507_s6 }
  0xcd   :  { %590 = vmatpush1.bf16.msra.mxu0 %v1350_v7  ;;  %p1514_p1 = por %p1513_p0, %p1512_p13 }
  0xce   :  { %591 = vmatprep.subr.bf16.mxu0 %v1355_v8 }
  0xcf   :  { %p1515_p2 = pnand %p1514_p1, %p1508_p12 }
  0xd1   :  { %592 = vmatpush1.bf16.msra.mxu0 %v1353_v9 }
  0xd2   :  { %593 = vmatprep.subr.bf16.mxu0 %v1358_v10 }
  0xd5   :  { %594 = vmatpush1.bf16.msra.mxu0 %v1356_v11 }
  0xd6   :  { %595 = vmatprep.subr.bf16.mxu0 %v1361_v12 }
  0xd9   :  { %596 = vmatpush1.bf16.msra.mxu0 %v1359_v13 }
  0xdc   :  { %598 = vmatmul.mubr.bf16.vlgmr.msra.gmra.mrb[0].mxu0 %v1362_v14 }
 0x1af   :  { %v599_v28 = vpop.f32.mrb[0].mxu0 }
 0x1b0   :  { %v1241_v29 = vadd.f32 %v599_v28, %v175_v26  ;;  %v601_v30 = vpop.f32.mrb[1].mxu0 }
 0x1b1   :  { %v1242_v31 = vadd.f32 %v601_v30, %v179_v27  ;;  %v603_v32 = vpop.f32.mrb[2].mxu0 }
 0x1b2   :  { %v1243_v33 = vadd.f32 %v603_v32, %v175_v26  ;;  %v605_v34 = vpop.f32.mrb[3].mxu0  ;;  %v608_v36 = vmax.f32 %v1241_v29, 0.0 }
 0x1b3   :  { %v1244_v35 = vadd.f32 %v605_v34, %v179_v27  ;;  %v609_v38 = vmax.f32 %v1242_v31, 0.0 }
 0x1b4   :  { %v610_v37 = vmax.f32 %v1243_v33, 0.0 }
 0x1b5   :  { %v611_v39 = vmax.f32 %v1244_v35, 0.0 }
 0x1b6   :  { %v612_v40 = vpack.c.bf16 %v610_v37, %v608_v36 }
 0x1b7   :  { %v613_v41 = vpack.c.bf16 %v611_v39, %v609_v38 }
 0x1b9   :  { %781 = vmatprep.mubr.bf16.mxu1 %v613_v41 }
 0x1ba   :  { %782 = vmatmul.mubr.bf16.vlgmr.msra.gmra.mrb[0].mxu1 %v612_v40 }
 0x1bb   :  { %1202 = vmatpush3.bf16.msra.mxu1 %v1381_v42  ;;  %1217 = vmatprep.mubr.msk.bf16.mxu1 %vm1549_vm0, %v1548_v20 }
 0x1bc   :  { %1203 = vmatprep.subr.bf16.mxu1 %v1548_v20 }
 0x1bf   :  { %1204 = vmatpush3.bf16.msra.mxu1 %v1382_v43 }
 0x1c0   :  { %1205 = vmatprep.subr.bf16.mxu1 %v1548_v20 }
 0x1c3   :  { %1206 = vmatpush3.bf16.msra.mxu1 %v1383_v44 }
 0x1c4   :  { %1207 = vmatprep.subr.bf16.mxu1 %v1548_v20 }
 0x1c7   :  { %1208 = vmatpush3.bf16.msra.mxu1 %v1384_v45 }
 0x1c8   :  { %1209 = vmatprep.subr.bf16.mxu1 %v1548_v20 }
 0x1cb   :  { %1210 = vmatpush3.bf16.msra.mxu1 %v1385_v46 }
 0x1cc   :  { %1211 = vmatprep.subr.bf16.mxu1 %v1548_v20 }
 0x1cf   :  { %1212 = vmatpush3.bf16.msra.mxu1 %v1386_v47 }
 0x1d0   :  { %1213 = vmatprep.subr.bf16.mxu1 %v1548_v20 }
 0x1d3   :  { %1214 = vmatpush3.bf16.msra.mxu1 %v1387_v48 }
 0x1d4   :  { %1215 = vmatprep.subr.bf16.mxu1 %v1548_v20 }
 0x1d7   :  { %1216 = vmatpush3.bf16.msra.mxu1 %v1388_v49 }
 0x1d8   :  { %1221 = vmatprep.subr.bf16.mxu1 %v1548_v20 }
 0x28d   :  { %v1177_v50 = vpop.f32.mrb[0].mxu1 }
 0x28e   :  { %v1178_v52 = vpop.f32.mrb[1].mxu1 }
 0x28f   :  { %v1179_v53 = vadd.f32 %v1178_v52, %v1177_v50  ;;  %v1180_v54 = vpop.f32.mrb[2].mxu1 }
 0x290   :  { %v1181_v55 = vpop.f32.mrb[3].mxu1 }
 0x291   :  { %v784_v56 = vadd.f32 %v1179_v53, %v1117_v51  ;;  %v1182_v57 = vadd.f32 %v1181_v55, %v1180_v54 }
 0x293   :  { %v787_v58 = vadd.f32 %v1182_v57, %v1117_v51  ;;  %v790_v59 = vmax.f32 %v784_v56, 0.0 }
 0x295   :  { %v791_v60 = vmax.f32 %v787_v58, 0.0 }
 0x297   :  { %v792_v62 = vpack.c.bf16 %v791_v60, %v790_v59 }
 0x299   :  { %1218 = vmatmul.mubr.bf16.vlgmr.msra.gmra.mrb[4].mxu1 %v792_v62 }
 0x29a   :  { %1222 = vmatpush3.bf16.msra.mxu1 %v1389_v61  ;;  %1237 = vmatprep.mubr.msk.bf16.mxu1 %vm1549_vm0, %v1548_v20 }
 0x29b   :  { %1223 = vmatprep.subr.bf16.mxu1 %v1548_v20 }
 0x29e   :  { %1224 = vmatpush3.bf16.msra.mxu1 %v1390_v63 }
 0x29f   :  { %1225 = vmatprep.subr.bf16.mxu1 %v1548_v20 }
 0x2a2   :  { %1226 = vmatpush3.bf16.msra.mxu1 %v1391_v0 }
 0x2a3   :  { %1227 = vmatprep.subr.bf16.mxu1 %v1548_v20 }
 0x2a6   :  { %1228 = vmatpush3.bf16.msra.mxu1 %v1392_v1 }
 0x2a7   :  { %1229 = vmatprep.subr.bf16.mxu1 %v1548_v20 }
 0x2aa   :  { %1230 = vmatpush3.bf16.msra.mxu1 %v1393_v2 }
 0x2ab   :  { %1231 = vmatprep.subr.bf16.mxu1 %v1548_v20 }
 0x2ae   :  { %1232 = vmatpush3.bf16.msra.mxu1 %v1394_v3 }
 0x2af   :  { %1233 = vmatprep.subr.bf16.mxu1 %v1548_v20 }
 0x2b2   :  { %1234 = vmatpush3.bf16.msra.mxu1 %v1395_v4 }
 0x2b3   :  { %1235 = vmatprep.subr.bf16.mxu1 %v1548_v20 }
 0x2b6   :  { %1236 = vmatpush3.bf16.msra.mxu1 %v1396_v5 }
 0x36c   :  { %v898_v7 = vpop.f32.mrb[4].mxu1 }
 0x36d   :  { %v899_v8 = vadd.f32 %v1134_v6, %v898_v7  ;;  %v1219_v9 = vpop.f32.mrb[5].mxu1 }
 0x36e   :  { %v901_v10 = vpop.f32.mrb[6].mxu1 }
 0x36f   :  { %v902_v11 = vadd.f32 %v1134_v6, %v901_v10  ;;  %v1220_v12 = vpop.f32.mrb[7].mxu1  ;;  %v905_v13 = vmax.f32 %v899_v8, 0.0 }
 0x371   :  { %v906_v14 = vmax.f32 %v902_v11, 0.0 }
 0x373   :  { %v907_v15 = vpack.c.bf16 %v906_v14, %v905_v13 }
 0x375   :  { %1238 = vmatmul.mubr.bf16.vlgmr.msra.gmra.mrb[8].mxu1 %v907_v15 }
 0x448   :  { %v1013_v17 = vpop.f32.mrb[8].mxu1 }
 0x449   :  { %v1239_v18 = vpop.f32.mrb[9].mxu1  ;;  %v1014_v20 = vadd.f32 %v1143_v16, %v1013_v17 }
 0x44a   :  { %v1016_v19 = vpop.f32.mrb[10].mxu1 }
 0x44b   :  { %v1017_v21 = vadd.f32 %v1143_v16, %v1016_v19  ;;  %v1240_v22 = vpop.f32.mrb[11].mxu1 }
 0x44d   :  { %v1159_v23 = vpack.c.bf16 %v1017_v21, %v1014_v20 }
 0x44f   :  { %1160 = vst [vmem:[#allocation11] sm:$0xff] %v1159_v23  }
 0x450   :  { %1518 = shalt.err (!%p1515_p2)
}
 0x451   :  { %s1519_s18 = scalar_lea.hbm %s1726_s9, 128 }
 0x452   :  { %p1520_p3 = scmp.ne.s32.totalorder %s1726_s9, %s1519_s18  ;;  %p1523_p4 = scmp.lt.u32.totalorder %s1519_s18, %s1726_s9 }
 0x454   :  { %p1525_p5 = pnand %p1523_p4, %p1520_p3 }
 0x456   :  { %1528 = shalt.err (!%p1525_p5)
}
 0x457   :  { %1041 = dma.vmem_to_hbm [thread:$0]  %s1036_s16, 128, %s1726_s9, [#allocation4], %s1542_s10, %s1542_s10, %s1543_s14  }
 0x458   :  { %1535 = dma.done.wait [#allocation4], 128  }
 0x459   :  { %1536 = vsyncadd [#allocation4], 4294967168 }
 0x45a   :  { %1045 = vsyncpa [#allocation3], 1 }
 0x45b   :  { %1046 = vsyncpa [#allocation6], 1 }
 0x45c   :  { %1047 = vsyncpa [#allocation9], 1 }
 0x45d   :  { %1048 = vsyncpa [#allocation4], 1 }

</bundles_post_ra>
